<compile_context>
chip_gen: v5e
topology: v5e:2x2
jax: 0.10.0
libtpu: 0.0.40
codegen_flags: <defaults>
</compile_context>

<pallas_src>
import functools
import itertools
import math

import jax
import jax.numpy as jnp
from jax import lax
from jax.experimental import pallas as pl
from jax.experimental.pallas import tpu as pltpu


def _round_up(n, m):
    return ((n + m - 1) // m) * m


def antecedent_kernel(logx_ref, sel_ref, out_ref, *, n_rules):
    """One (batch tile, rule tile) block of fire strengths.

    logx_ref: (BT, K)  f32  clamped log-memberships (resident across rule tiles)
    sel_ref:  (K, TR)  bf16 one-hot selection slab for this rule tile
    out_ref:  (BT, TR) f32  fire strengths; padded rule columns stored as 0.0
    """
    logx = logx_ref[...]
    # bf16 hi/lo split: two default-precision MXU passes give ~f32 accuracy for
    # the selected sums (sel is exactly 0/1), vs 6 passes with Precision.HIGHEST
    # and no per-tile upcast of the sel slab.
    hi = logx.astype(jnp.bfloat16)
    lo = (logx - hi.astype(jnp.float32)).astype(jnp.bfloat16)
    sel = sel_ref[...]                                             # (K, TR) bf16
    s = jnp.dot(hi, sel, preferred_element_type=jnp.float32)       # MXU pass 1
    s += jnp.dot(lo, sel, preferred_element_type=jnp.float32)      # MXU pass 2
    # Mask padded rule columns to exact 0 so the padded output can be consumed
    # without a wrapper-side slice (they would otherwise read exp(0) = 1).
    tr = out_ref.shape[1]
    col = pl.program_id(1) * tr + lax.broadcasted_iota(jnp.int32, s.shape, 1)
    out_ref[...] = jnp.where(col < n_rules, jnp.exp(s), 0.0)       # EUP exp + VPU select


def build_selection(mf_indices, n_in, n_mfs, rule_tile=4096):
    """Build the 0/1 selection table ONCE at setup (module-init analogue).

    sel[i * n_mfs + m, r] = 1  iff  mf_indices[r, i] == m   (else 0)
    Stored as bfloat16 (exact for 0/1) to halve its DMA bytes.  The rule axis
    is padded to a multiple of the chosen rule tile; padded columns are all
    zero and are masked to 0 fire strength in-kernel.
    Returns (sel, rule_tile_used, n_rules).
    """
    n_rules = int(mf_indices.shape[0])
    # Lane-dense rule tile, as large as practical: per grid step the kernel
    # moves only ~K*TR*2 + B*TR*4 bytes and issues two small vmatmuls, so the
    # ~0.35us/step pipeline overhead dominates for small tiles.  Multiple of
    # 256 (full MXU column pass on v6e/v7x; also 128-aligned for v5e).  VMEM is
    # never the constraint here (tiles are KB..sub-MB on all generations).
    rp0 = _round_up(n_rules, 128)
    tr = min(rule_tile, rp0)
    if tr >= 256:
        tr = (tr // 256) * 256
    rp = _round_up(n_rules, tr)
    # (v7x: with realistic rule counts and tr=4096 the tile count is >= 2, so
    #  the "parallel" rule axis shards across both TensorCores.)
    onehot = (
        mf_indices[:, :, None]
        == jnp.arange(n_mfs, dtype=mf_indices.dtype)[None, None, :]
    )                                                   # (n_rules, n_in, n_mfs)
    sel = onehot.reshape(n_rules, n_in * n_mfs).T.astype(jnp.bfloat16)  # (K, n_rules)
    sel = jnp.pad(sel, ((0, 0), (0, rp - n_rules)))                     # (K, RP)
    return sel, tr, n_rules


def antecedent_forward(x, sel, rule_tile, n_rules, *, trim=False,
                       batch_tile=256, eps=1e-30):
    """Fire strengths for every rule.

    x:   (B, n_in, n_mfs) float32 membership values (assumed in [0, 1])
    sel: (K, RP)          bfloat16 selection table from build_selection
    Returns the padded (B, RP) buffer (padded columns exactly 0.0) when
    trim=False -- the preferred, slice-free hot path -- or the module-exact
    (B, n_rules) slice when trim=True (costs one extra HBM copy).
    """
    B, n_in, n_mfs = x.shape
    K = n_in * n_mfs
    RP = sel.shape[1]
    assert RP % rule_tile == 0

    # Hoisted out of the kernel body: the clamp + log over (B, K) runs once,
    # not once per rule tile.  eps keeps log finite for exact-zero memberships.
    logx = jnp.log(jnp.maximum(x.reshape(B, K).astype(jnp.float32), eps))

    # Batch tiling: multiple-of-8 sublane blocks, up to `batch_tile` rows, so
    # large batches fill the MXU M dimension; B=8 is a single tile.
    bp = _round_up(B, 8)
    bt = min(_round_up(batch_tile, 8), bp)
    bp = _round_up(bp, bt)
    if bp != B:
        logx = jnp.pad(logx, ((0, bp - B), (0, 0)))   # padded rows are discarded

    grid = (bp // bt, RP // rule_tile)
    out = pl.pallas_call(
        functools.partial(antecedent_kernel, n_rules=n_rules),
        out_shape=jax.ShapeDtypeStruct((bp, RP), jnp.float32),
        grid=grid,
        in_specs=[
            # logx is tiny and rule-invariant: resident across the rule axis.
            pl.BlockSpec((bt, K), lambda b, r: (b, 0)),
            # Per-tile lane-dense slab of the bf16 selection table.
            pl.BlockSpec((K, rule_tile), lambda b, r: (0, r)),
        ],
        out_specs=pl.BlockSpec((bt, rule_tile), lambda b, r: (b, r)),
        compiler_params=pltpu.CompilerParams(
            dimension_semantics=("parallel", "parallel"),
        ),
    )(logx, sel)

    if bp != B:
        out = out[:B]
    return out[:, :n_rules] if trim else out


def antecedent_reference(x, mf_indices):
    """Pure-JAX reference mirroring torch.gather(x.transpose(1,2), 1, idx).prod(2)."""
    B = x.shape[0]
    n_rules, n_in = mf_indices.shape
    x_t = jnp.transpose(x, (0, 2, 1))                              # (B, n_mfs, n_in)
    idx = jnp.broadcast_to(mf_indices[None, :, :], (B, n_rules, n_in))
    ants = jnp.take_along_axis(x_t, idx, axis=1)                   # (B, n_rules, n_in)
    return jnp.prod(ants, axis=2)                                  # (B, n_rules)


if __name__ == "__main__":
    # Small problem consistent with the module: 4 input variables, 3 MFs each
    # -> n_rules = 3**4 = 81 rules (default: all combinations, AND_p).
    n_in, n_mfs, batch = 4, 3, 8
    mf_count = [n_mfs] * n_in
    mf_indices = jnp.asarray(
        list(itertools.product(*[range(n) for n in mf_count])), dtype=jnp.int32
    )  # (81, 4)
    assert mf_indices.shape == (math.prod(mf_count), n_in)

    key = jax.random.PRNGKey(0)
    # Membership values in [0, 1), like the output of a fuzzification layer.
    x = jax.random.uniform(key, (batch, n_in, n_mfs), dtype=jnp.float32)

    # Selection table is built once (module-init time), not per forward call.
    sel, rule_tile, n_rules = build_selection(mf_indices, n_in, n_mfs)

    # Slice-free hot path: padded (B, RP) output, padded rule columns == 0.
    y_pad = antecedent_forward(x, sel, rule_tile, n_rules, trim=False)
    y_pad = jax.block_until_ready(y_pad)

    y_ref = antecedent_reference(x, mf_indices)
    assert y_pad.shape == (batch, sel.shape[1]), y_pad.shape
    assert jnp.allclose(y_pad[:, :n_rules], y_ref, rtol=1e-4, atol=1e-6), \
        "mismatch vs reference"
    if sel.shape[1] > n_rules:
        assert bool(jnp.all(y_pad[:, n_rules:] == 0.0)), "padding not masked"

    print("KERNEL_OK")
</pallas_src>

<mosaic_0001>
module attributes {stable_mosaic.version = 11 : i64} {
  func.func @antecedent_kernel(%arg0: i32, %arg1: i32, %arg2: memref<8x12xf32, #tpu.memory_space<vmem>>, %arg3: memref<12x128xbf16, #tpu.memory_space<vmem>>, %arg4: memref<8x128xf32, #tpu.memory_space<vmem>>) attributes {dimension_semantics = [#tpu.dimension_semantics<parallel>, #tpu.dimension_semantics<parallel>], iteration_bounds = array<i64: 1, 1>, scalar_prefetch = 0 : i64, scratch_operands = 0 : i64, tpu.core_type = #tpu.core_type<tc>, window_params = [{transform_indices = @transform_0, window_bounds = array<i64: 8, 12>}, {transform_indices = @transform_1, window_bounds = array<i64: 12, 128>}, {transform_indices = @transform_2, window_bounds = array<i64: 8, 128>}]} {
    %c0 = arith.constant 0 : index
    %c0_0 = arith.constant 0 : index
    %0 = vector.load %arg2[%c0, %c0_0] : memref<8x12xf32, #tpu.memory_space<vmem>>, vector<8x12xf32>
    %1 = arith.truncf %0 : vector<8x12xf32> to vector<8x12xbf16>
    %2 = arith.extf %1 : vector<8x12xbf16> to vector<8x12xf32>
    %3 = arith.subf %0, %2 : vector<8x12xf32>
    %4 = arith.truncf %3 : vector<8x12xf32> to vector<8x12xbf16>
    %c0_1 = arith.constant 0 : index
    %c0_2 = arith.constant 0 : index
    %5 = vector.load %arg3[%c0_1, %c0_2] : memref<12x128xbf16, #tpu.memory_space<vmem>>, vector<12x128xbf16>
    %cst = arith.constant dense<0.000000e+00> : vector<8x128xf32>
    %6 = tpu.matmul %1, %5, %cst {dimension_numbers = #tpu.dot_dimension_numbers<[1], [0], [0], [1], [0, 0, 1, 1], [], []>} : vector<8x12xbf16>, vector<12x128xbf16>, vector<8x128xf32> -> vector<8x128xf32>
    %cst_3 = arith.constant dense<0.000000e+00> : vector<8x128xf32>
    %7 = tpu.matmul %4, %5, %cst_3 {dimension_numbers = #tpu.dot_dimension_numbers<[1], [0], [0], [1], [0, 0, 1, 1], [], []>} : vector<8x12xbf16>, vector<12x128xbf16>, vector<8x128xf32> -> vector<8x128xf32>
    %8 = arith.addf %6, %7 : vector<8x128xf32>
    %c128_i32 = arith.constant 128 : i32
    %9 = arith.muli %arg1, %c128_i32 : i32
    %10 = tpu.iota {dimensions = array<i32: 1>} : vector<8x128xi32>
    %11 = vector.broadcast %9 : i32 to vector<8x128xi32>
    %12 = arith.addi %11, %10 : vector<8x128xi32>
    %c81_i32 = arith.constant 81 : i32
    %13 = vector.broadcast %c81_i32 : i32 to vector<8x128xi32>
    %14 = arith.cmpi slt, %12, %13 : vector<8x128xi32>
    %15 = math.exp %8 : vector<8x128xf32>
    %cst_4 = arith.constant 0.000000e+00 : f32
    %16 = vector.broadcast %cst_4 : f32 to vector<8x128xf32>
    %17 = arith.select %14, %15, %16 : vector<8x128xi1>, vector<8x128xf32>
    %c0_5 = arith.constant 0 : index
    %c0_6 = arith.constant 0 : index
    %18 = vector.load %arg4[%c0_5, %c0_6] : memref<8x128xf32, #tpu.memory_space<vmem>>, vector<8x128xf32>
    tpu.vector_store %arg4[%c0_5, %c0_6], %17 {strides = array<i32>} : memref<8x128xf32, #tpu.memory_space<vmem>>, vector<8x128xf32>,
    return
  }
  func.func @transform_0(%arg0: i32, %arg1: i32) -> (i32, i32) {
    %c0_i32 = arith.constant 0 : i32
    %c0_i32_0 = arith.constant 0 : i32
    return %arg0, %c0_i32 : i32, i32
  }
  func.func @transform_1(%arg0: i32, %arg1: i32) -> (i32, i32) {
    %c0_i32 = arith.constant 0 : i32
    %c0_i32_0 = arith.constant 0 : i32
    return %c0_i32, %arg1 : i32, i32
  }
  func.func @transform_2(%arg0: i32, %arg1: i32) -> (i32, i32) {
    %c0_i32 = arith.constant 0 : i32
    return %arg0, %arg1 : i32, i32
  }
}

</mosaic_0001>

<bundles_post_ra>
// kernel: tpu_custom_call.1
= control target key start
LH: loop header
LB: loop body
LE: loop exit
PB: predicated region body
PF: predicated region fallthrough
CT: control target
= control target key end

     0   :  { %7 = vsyncpa [#allocation3], 0  ;;  %s241_s0 = inlined_call_operand.hbm [shape: f32[8,12], index: 0, kind: input, shape index: {}]   ;;  %s242_s1 = inlined_call_operand.hbm [shape: bf16[12,128], index: 1, kind: input, shape index: {}]   ;;  %s243_s2 = inlined_call_operand.hbm [shape: f32[8,128], index: 2, kind: output, shape index: {}]  }
   0x1   :  { %8 = vsyncpa [#allocation6], 0 }
   0x2   :  { %9 = vsyncpa [#allocation4], 0  ;;  %s15_s11 = sshll.u32 %s241_s0, 4  ;;  %s212_s12 = smov [#allocation2]   ;;  %s16_s11 = int_to_ptr.hbm [resolvable:$true] %s15_s11 }
   0x3   :  { %s17_s13 = sshll.u32 %s212_s12, 4  ;;  %s25_s16 = sshll.u32 %s242_s1, 4  ;;  %s18_s13 = int_to_ptr.vmem [resolvable:$true] %s17_s13  ;;  %s26_s16 = int_to_ptr.hbm [resolvable:$true] %s25_s16 }
   0x4   :  { %20 = dma.hbm_to_vmem [thread:$0]  %s16_s11, 128, %s18_s13, [#allocation3]  }
   0x5   :  { %s213_s17 = smov [#allocation5]   ;;  %s214_s19 = smov 64  }
   0x6   :  { %s27_s18 = sshll.u32 %s213_s17, 4  ;;  %s215_s20 = smov 4   ;;  %s28_s18 = int_to_ptr.vmem [resolvable:$true] %s27_s18 }
   0x7   :  { %33 = dma.hbm_to_vmem [thread:$0]  %s26_s16, 128, %s28_s18, [#allocation6], %s214_s19, %s214_s19, %s215_s20  }
   0x8   :  { %206 = dma.done.wait [#allocation3], 128  }
   0x9   :  { %207 = vsyncadd [#allocation3], 4294967168 }
   0xa   :  { %208 = dma.done.wait [#allocation6], 128  }
   0xb   :  { %209 = vsyncadd [#allocation6], 4294967168  ;;  %v122_v0 = vld [vmem:[#allocation5] sm:$0xf]  ;;  %v126_v1 = vld [vmem:[#allocation5] sm:$0x30]  ;;  %v93_v12 = vlaneseq }
   0xc   :  { %vm59_vm0 = vcmask 1045504   ;;  %v43_v2 = vld [vmem:[#allocation2] sm:$0xff]  ;;  %v123_v3 = vor.u32 %v126_v1, %v122_v0  ;;  %vm55_vm1 = vcmask 97280   ;;  %s216_s0 = smov [#allocation7]   ;;  %s109_s23 = sshll.u32 %s243_s2, 4  ;;  %s110_s23 = int_to_ptr.hbm [resolvable:$true] %s109_s23 }
   0xd   :  { %v44_v4 = vpack.c.bf16 %v43_v2, %v43_v2  ;;  %v94_v14 = vand.u32 127, %v93_v12  ;;  %s107_s1 = sshll.u32 %s216_s0, 4  ;;  %s108_s1 = int_to_ptr.vmem [resolvable:$true] %s107_s1 }
   0xe   :  { %v61_v5 = vsel %vm59_vm0, %v123_v3, 0 }
   0xf   :  { %v45_v6 = vunpack.c.l.bf16 %v44_v4  ;;  %86 = vmatpush.bf16.msra.mxu1 %v61_v5  ;;  %70 = vmatpush.bf16.msra.mxu0 %v61_v5  ;;  %vm97_vm2 = vcmp.lt.s32.totalorder %v94_v14, 81 }
  0x11   :  { %v46_v7 = vsub.f32 %v43_v2, %v45_v6 }
  0x12   :  { %125 = vmatmul.msk.bf16.vlgmr.msra.gmra.mxu1 %vm55_vm1, %v44_v4 }
  0x13   :  { %v47_v8 = vpack.c.bf16 %v46_v7, %v46_v7 }
  0x15   :  { %124 = vmatmul.msk.bf16.vlgmr.msra.gmra.mxu0 %vm55_vm1, %v47_v8 }
  0x8f   :  { %v88_v9 = vpop.f32.mrf.mxu1 }
  0x92   :  { %v72_v10 = vpop.f32.mrf.mxu0 }
  0x93   :  { %v89_v11 = vadd.f32 %v88_v9, %v72_v10 }
  0x95   :  { %v98_v13 = vmul.f32 1.442695, %v89_v11 }
  0x97   :  { %132 = vpow2.f32 %v98_v13  ;;  %v90_v15 = vpop.f32.mrf.mxu1 }
  0x9a   :  { %v74_v16 = vpop.f32.mrf.mxu0 }
  0x9d   :  { %v133_v17 = vpop.eup %132 }
  0x9e   :  { %v100_v18 = vsel %vm97_vm2, %v133_v17, 0.0 }
  0x9f   :  { %101 = vst [vmem:[#allocation7] sm:$0xff] %v100_v18 }
  0xa0   :  { %112 = dma.vmem_to_hbm [thread:$0]  %s108_s1, 128, %s110_s23, [#allocation4]  }
  0xa1   :  { %210 = dma.done.wait [#allocation4], 128  }
  0xa2   :  { %211 = vsyncadd [#allocation4], 4294967168 }
  0xa3   :  { %117 = vsyncpa [#allocation3], 1 }
  0xa4   :  { %118 = vsyncpa [#allocation6], 1 }
  0xa5   :  { %119 = vsyncpa [#allocation4], 1 }

</bundles_post_ra>
